<compile_context>
chip_gen: v6e
topology: v6e:2x2x1
jax: 0.10.0
libtpu: 0.0.40
codegen_flags: <defaults>
</compile_context>

<pallas_src>
import math
from functools import reduce
from operator import mul

import jax
import jax.numpy as jnp
from jax.experimental import pallas as pl
from jax.experimental.pallas import tpu as pltpu


def _round_up(x, m):
    return ((x + m - 1) // m) * m


# ----------------------------- Pallas kernel -------------------------------

def _mlp_kernel(x_ref, w1_ref, b1_ref, w2_ref, b2_ref, w3_ref, b3_ref, o_ref):
    """Whole forward for one batch tile: 3 MXU matmuls (bf16 in, f32 accum) + bias + ReLU.

    fc2a/fc2v are merged in w2; the dueling combine is pre-folded into w3/b3; P batch rows are
    packed per kernel row so every operand and the output are lane-dense (>=128 lanes).  The
    final Q distribution is stored in bf16.
    """
    x = x_ref[...]                                                      # bf16 (tb, P*in)
    h = jnp.maximum(
        jnp.dot(x, w1_ref[...], preferred_element_type=jnp.float32) + b1_ref[...], 0.0)
    h = h.astype(jnp.bfloat16)
    h2 = jnp.maximum(
        jnp.dot(h, w2_ref[...], preferred_element_type=jnp.float32) + b2_ref[...], 0.0)
    h2 = h2.astype(jnp.bfloat16)                                        # [ha | hv] per packed slot
    q = jnp.dot(h2, w3_ref[...], preferred_element_type=jnp.float32) + b3_ref[...]
    o_ref[...] = q.astype(o_ref.dtype)                                  # bf16 lane-dense store


# ----------------------------- parameter setup -----------------------------

def _init_linear(key, in_features, out_features, num_agents):
    """Deterministic init matching torch.nn.Linear defaults + inter-agent weight zeroing."""
    num_in = in_features * num_agents
    num_out = out_features * num_agents
    kw, kb = jax.random.split(key)
    bound = 1.0 / math.sqrt(num_in)
    w = jax.random.uniform(kw, (num_out, num_in), jnp.float32, -bound, bound)
    b = jax.random.uniform(kb, (num_out,), jnp.float32, -bound, bound)
    if num_agents > 1:
        # block-diagonal mask: agent k's outputs only see agent k's inputs
        mask = jnp.kron(jnp.eye(num_agents, dtype=jnp.float32),
                        jnp.ones((out_features, in_features), jnp.float32))
        w = w * mask
    return w, b


def make_params(state_shape, num_actions, num_hidden, num_atoms, num_agents, key):
    in_features = reduce(mul, state_shape)
    keys = jax.random.split(key, 5)
    return {
        "fc1":  _init_linear(keys[0], in_features, num_hidden, num_agents),
        "fc2a": _init_linear(keys[1], num_hidden, num_hidden, num_agents),
        "fc2v": _init_linear(keys[2], num_hidden, num_hidden, num_agents),
        "fc3a": _init_linear(keys[3], num_hidden, num_actions * num_atoms, num_agents),
        "fc3v": _init_linear(keys[4], num_hidden, num_atoms, num_agents),
    }


def fold_params(params, *, num_actions, num_atoms, num_agents, pack=4):
    """One-time fold: transpose, merge fc2a/fc2v, fold dueling combine into fc3, replicate
    block-diagonally `pack` times (lane packing), cast weights to bf16.

    Forward with the folded params is  relu(relu(xp @ w1 + b1) @ w2 + b2) @ w3 + b3  where each
    row of xp holds `pack` original batch rows side-by-side; the output row holds the `pack`
    corresponding Q distributions, flat as (agents*actions*atoms) each, lane-dense.
    """
    w1, b1 = params["fc1"]
    w2a, b2a = params["fc2a"]
    w2v, b2v = params["fc2v"]
    w3a, b3a = params["fc3a"]
    w3v, b3v = params["fc3v"]

    A, M = num_actions, num_atoms
    eye_g = jnp.eye(num_agents, dtype=jnp.float32)
    # out[act, atom] = a[act, atom] - mean_act(a[:, atom])   (per agent)
    center = jnp.eye(A, dtype=jnp.float32) - jnp.full((A, A), 1.0 / A, jnp.float32)
    T = jnp.kron(eye_g, jnp.kron(center, jnp.eye(M, dtype=jnp.float32)))
    # out[act, atom] = v[atom]   (broadcast across actions, per agent)
    Bc = jnp.kron(eye_g, jnp.kron(jnp.ones((1, A), jnp.float32),
                                  jnp.eye(M, dtype=jnp.float32)))

    w1_t = w1.T                                               # (in_total, hidden_total)
    w2_t = jnp.concatenate([w2a.T, w2v.T], axis=1)            # (hidden_total, 2*hidden_total)
    b2 = jnp.concatenate([b2a, b2v])
    w3_t = jnp.concatenate([w3a.T @ T, w3v.T @ Bc], axis=0)   # (2*hidden_total, out_total)
    b3 = b3a @ T + b3v @ Bc

    # lane-packing replication (block-diagonal zeros survive the bf16 cast exactly)
    eye_p = jnp.eye(pack, dtype=jnp.float32)
    rep_w = lambda w: jnp.kron(eye_p, w)
    rep_b = lambda b: jnp.tile(b, pack)

    return {
        "w1": rep_w(w1_t).astype(jnp.bfloat16), "b1": rep_b(b1)[None, :].astype(jnp.float32),
        "w2": rep_w(w2_t).astype(jnp.bfloat16), "b2": rep_b(b2)[None, :].astype(jnp.float32),
        "w3": rep_w(w3_t).astype(jnp.bfloat16), "b3": rep_b(b3)[None, :].astype(jnp.float32),
    }


# ------------------------------ forward pass -------------------------------

def ensemble_forward(x, folded, *, state_ndim, num_actions, num_atoms, num_agents,
                     pack=4, tile_rows=512, out_dtype=jnp.bfloat16):
    """Forward pass.

    x: (batch, agents) + state_shape  -> (batch, agents, actions, atoms)
       state_shape                    -> (agents, actions, atoms)   (single-state path)
    Output dtype is bf16 by default (halves the dominant HBM write stream); pass
    out_dtype=jnp.float32 for full-precision stores.
    """
    P = pack
    in_packed, hid_packed = folded["w1"].shape
    h2_packed = folded["w2"].shape[1]
    out_packed = folded["w3"].shape[1]
    in_total = in_packed // P
    out_total = out_packed // P

    single = (x.ndim == state_ndim)
    if single:
        # input.flatten().repeat(num_agents): every agent sees the same state
        x2 = jnp.tile(x.reshape(-1), num_agents).reshape(1, in_total)
        B = 1
    else:
        B = x.shape[0]
        x2 = x.reshape(B, -1)                     # flatten(start_dim=-state_ndim-1)
    x2 = x2.astype(jnp.bfloat16)

    # ---- pack P batch rows per kernel row (row-major reshape = free view) ----
    B_eff = _round_up(B, P)
    if B_eff != B:                                 # at most P-1 pad rows
        x2 = jnp.pad(x2, ((0, B_eff - B), (0, 0)))
    Bp = B_eff // P
    xp = x2.reshape(Bp, in_packed)

    # ---- packed-row tile selection: 16-row aligned (bf16 sublanes), capped at tile_rows,
    #      >=2 grid steps when the batch allows (v7x 2-TC megacore + pipeline overlap) ----
    if Bp <= 16:
        tbp, Bp_pad = Bp, Bp                       # single full-extent tile, no padding
    else:
        Bp_pad = _round_up(Bp, 16)
        tbp = min(tile_rows, Bp_pad)
        if Bp_pad // tbp < 2 and Bp_pad >= 32:
            tbp = _round_up(Bp_pad // 2, 16)
        Bp_pad = _round_up(Bp_pad, tbp)
    if Bp_pad != Bp:
        xp = jnp.pad(xp, ((0, Bp_pad - Bp), (0, 0)))
    n_tiles = Bp_pad // tbp

    out_itemsize = 2 if out_dtype in (jnp.bfloat16, jnp.float16) else 4
    flops = 2 * Bp_pad * (in_packed * hid_packed
                          + hid_packed * h2_packed
                          + h2_packed * out_packed)
    weight_bytes = sum(int(folded[k].size) * folded[k].dtype.itemsize
                       for k in ("w1", "b1", "w2", "b2", "w3", "b3"))
    bytes_accessed = (int(xp.size) * xp.dtype.itemsize + weight_bytes
                      + Bp_pad * out_packed * out_itemsize)

    out_p = pl.pallas_call(
        _mlp_kernel,
        out_shape=jax.ShapeDtypeStruct((Bp_pad, out_packed), out_dtype),
        grid=(n_tiles,),
        in_specs=[
            pl.BlockSpec((tbp, in_packed), lambda i: (i, 0)),             # x tile (lane-dense)
            pl.BlockSpec((in_packed, hid_packed), lambda i: (0, 0)),      # w1 (VMEM-resident)
            pl.BlockSpec((1, hid_packed), lambda i: (0, 0)),              # b1
            pl.BlockSpec((hid_packed, h2_packed), lambda i: (0, 0)),      # w2 (merged a|v)
            pl.BlockSpec((1, h2_packed), lambda i: (0, 0)),               # b2
            pl.BlockSpec((h2_packed, out_packed), lambda i: (0, 0)),      # w3 (dueling folded)
            pl.BlockSpec((1, out_packed), lambda i: (0, 0)),              # b3
        ],
        out_specs=pl.BlockSpec((tbp, out_packed), lambda i: (i, 0)),
        compiler_params=pltpu.CompilerParams(
            dimension_semantics=("parallel",)),       # batch tiles shard across TCs (v7x)
        cost_estimate=pl.CostEstimate(
            flops=int(flops), transcendentals=0, bytes_accessed=int(bytes_accessed)),
    )(xp, folded["w1"], folded["b1"], folded["w2"], folded["b2"],
      folded["w3"], folded["b3"])

    # unpack lanes back to batch rows (free row-major view) and drop pad rows
    out_flat = out_p.reshape(Bp_pad * P, out_total)[:B]
    if single:
        return out_flat.reshape(num_agents, num_actions, num_atoms)
    return out_flat.reshape(B, num_agents, num_actions, num_atoms)


# ------------------------------ references (pure JAX) ------------------------

def _reference_packed(x2, folded, *, pack):
    """Mirror of the kernel math (same packed bf16 weights, f32 accumulation) in plain jnp."""
    P = pack
    B = x2.shape[0]
    B_eff = _round_up(B, P)
    xb = jnp.pad(x2.astype(jnp.bfloat16), ((0, B_eff - B), (0, 0)))
    xp = xb.reshape(B_eff // P, -1)
    h = jnp.maximum(jnp.dot(xp, folded["w1"], preferred_element_type=jnp.float32)
                    + folded["b1"], 0.0).astype(jnp.bfloat16)
    h2 = jnp.maximum(jnp.dot(h, folded["w2"], preferred_element_type=jnp.float32)
                     + folded["b2"], 0.0).astype(jnp.bfloat16)
    q = (jnp.dot(h2, folded["w3"], preferred_element_type=jnp.float32)
         + folded["b3"]).astype(jnp.bfloat16)
    out_total = folded["w3"].shape[1] // P
    return q.reshape(B_eff, out_total)[:B].astype(jnp.float32)


def _reference_original(x, params, *, num_actions, num_atoms, num_agents):
    """Original module math in f32 (unfused, unfolded, unpacked)."""
    B = x.shape[0]
    xf = x.reshape(B, -1).astype(jnp.float32)

    def lin(name, z):
        w, b = params[name]
        return z @ w.T + b

    h = jax.nn.relu(lin("fc1", xf))
    ha = jax.nn.relu(lin("fc2a", h))
    hv = jax.nn.relu(lin("fc2v", h))
    a = lin("fc3a", ha).reshape(B, num_agents, num_actions, num_atoms)
    v = lin("fc3v", hv).reshape(B, num_agents, 1, num_atoms)
    return v + a - a.mean(axis=-2, keepdims=True)


# ---------------------------------- main ------------------------------------

if __name__ == "__main__":
    state_shape = (4, 4)      # environment state is 4x4
    num_actions = 4
    num_hidden = 32
    num_atoms = 8
    num_agents = 2
    batch = 8
    pack = 4                  # 4 batch rows per kernel row -> 128/256/512/256-lane operands

    key = jax.random.PRNGKey(0)
    kx, kp = jax.random.split(key)

    params = make_params(state_shape, num_actions, num_hidden, num_atoms, num_agents, kp)
    folded = fold_params(params, num_actions=num_actions, num_atoms=num_atoms,
                         num_agents=num_agents, pack=pack)

    def fwd(xin):
        return ensemble_forward(
            xin, folded, state_ndim=len(state_shape), num_actions=num_actions,
            num_atoms=num_atoms, num_agents=num_agents, pack=pack)

    # --- batched (train) path: (batch, agents) + state_shape ---
    x = jax.random.normal(kx, (batch, num_agents) + state_shape, dtype=jnp.float32)
    out = jax.block_until_ready(fwd(x))
    assert out.shape == (batch, num_agents, num_actions, num_atoms), out.shape
    out_f32 = out.astype(jnp.float32)

    # strict check: identical packed-bf16 weights / f32-accumulation path in plain jnp
    ref_strict = _reference_packed(x.reshape(batch, -1), folded, pack=pack).reshape(out.shape)
    assert jnp.allclose(out_f32, ref_strict, atol=2e-2, rtol=2e-2), \
        "mismatch vs packed-bf16 reference"

    # loose check: original unfolded f32 math (tolerance covers bf16 weights/activations/output)
    ref_f32 = _reference_original(
        x, params, num_actions=num_actions, num_atoms=num_atoms, num_agents=num_agents)
    assert jnp.allclose(out_f32, ref_f32, atol=8e-2, rtol=8e-2), \
        "mismatch vs original f32 reference"

    # single-state (agent.step) path: shape state_shape -> (agents, actions, atoms)
    x1 = jax.random.normal(jax.random.PRNGKey(1), state_shape, dtype=jnp.float32)
    out1 = jax.block_until_ready(fwd(x1))
    assert out1.shape == (num_agents, num_actions, num_atoms), out1.shape

    # larger batch: exercises the multi-tile grid path (>=2 "parallel" tiles for megacore)
    xb = jax.random.normal(jax.random.PRNGKey(2), (2048, num_agents) + state_shape,
                           dtype=jnp.float32)
    outb = jax.block_until_ready(fwd(xb))
    assert outb.shape == (2048, num_agents, num_actions, num_atoms), outb.shape
    refb = _reference_packed(xb.reshape(2048, -1), folded, pack=pack).reshape(outb.shape)
    assert jnp.allclose(outb.astype(jnp.float32), refb, atol=2e-2, rtol=2e-2), \
        "mismatch on multi-tile batch"

    print("KERNEL_OK")
</pallas_src>

<mosaic_0001>
module attributes {stable_mosaic.version = 11 : i64} {
  func.func @_mlp_kernel(%arg0: i32, %arg1: memref<2x128xbf16, #tpu.memory_space<vmem>>, %arg2: memref<128x256xbf16, #tpu.memory_space<vmem>>, %arg3: memref<1x256xf32, #tpu.memory_space<vmem>>, %arg4: memref<256x512xbf16, #tpu.memory_space<vmem>>, %arg5: memref<1x512xf32, #tpu.memory_space<vmem>>, %arg6: memref<512x256xbf16, #tpu.memory_space<vmem>>, %arg7: memref<1x256xf32, #tpu.memory_space<vmem>>, %arg8: memref<2x256xbf16, #tpu.memory_space<vmem>>) attributes {dimension_semantics = [#tpu.dimension_semantics<parallel>], iteration_bounds = array<i64: 1>, scalar_prefetch = 0 : i64, scratch_operands = 0 : i64, tpu.core_type = #tpu.core_type<tc>, window_params = [{transform_indices = @transform_0, window_bounds = array<i64: 2, 128>}, {pipeline_mode = #tpu.pipeline_mode<synchronous>, transform_indices = @transform_1, window_bounds = array<i64: 128, 256>}, {pipeline_mode = #tpu.pipeline_mode<synchronous>, transform_indices = @transform_2, window_bounds = array<i64: 1, 256>}, {pipeline_mode = #tpu.pipeline_mode<synchronous>, transform_indices = @transform_3, window_bounds = array<i64: 256, 512>}, {pipeline_mode = #tpu.pipeline_mode<synchronous>, transform_indices = @transform_4, window_bounds = array<i64: 1, 512>}, {pipeline_mode = #tpu.pipeline_mode<synchronous>, transform_indices = @transform_5, window_bounds = array<i64: 512, 256>}, {pipeline_mode = #tpu.pipeline_mode<synchronous>, transform_indices = @transform_6, window_bounds = array<i64: 1, 256>}, {transform_indices = @transform_7, window_bounds = array<i64: 2, 256>}]} {
    %c0 = arith.constant 0 : index
    %c0_0 = arith.constant 0 : index
    %0 = vector.load %arg1[%c0, %c0_0] : memref<2x128xbf16, #tpu.memory_space<vmem>>, vector<2x128xbf16>
    %c0_1 = arith.constant 0 : index
    %c0_2 = arith.constant 0 : index
    %1 = vector.load %arg2[%c0_1, %c0_2] : memref<128x256xbf16, #tpu.memory_space<vmem>>, vector<128x256xbf16>
    %cst = arith.constant dense<0.000000e+00> : vector<2x256xf32>
    %2 = tpu.matmul %0, %1, %cst {dimension_numbers = #tpu.dot_dimension_numbers<[1], [0], [0], [1], [0, 0, 1, 1], [], []>} : vector<2x128xbf16>, vector<128x256xbf16>, vector<2x256xf32> -> vector<2x256xf32>
    %c0_3 = arith.constant 0 : index
    %c0_4 = arith.constant 0 : index
    %3 = vector.load %arg3[%c0_3, %c0_4] : memref<1x256xf32, #tpu.memory_space<vmem>>, vector<1x256xf32>
    %4 = vector.broadcast %3 : vector<1x256xf32> to vector<2x256xf32>
    %5 = arith.addf %2, %4 : vector<2x256xf32>
    %cst_5 = arith.constant 0.000000e+00 : f32
    %6 = vector.broadcast %cst_5 : f32 to vector<2x256xf32>
    %7 = arith.maximumf %5, %6 : vector<2x256xf32>
    %8 = arith.truncf %7 : vector<2x256xf32> to vector<2x256xbf16>
    %c0_6 = arith.constant 0 : index
    %c0_7 = arith.constant 0 : index
    %9 = vector.load %arg4[%c0_6, %c0_7] : memref<256x512xbf16, #tpu.memory_space<vmem>>, vector<256x512xbf16>
    %cst_8 = arith.constant dense<0.000000e+00> : vector<2x512xf32>
    %10 = tpu.matmul %8, %9, %cst_8 {dimension_numbers = #tpu.dot_dimension_numbers<[1], [0], [0], [1], [0, 0, 1, 1], [], []>} : vector<2x256xbf16>, vector<256x512xbf16>, vector<2x512xf32> -> vector<2x512xf32>
    %c0_9 = arith.constant 0 : index
    %c0_10 = arith.constant 0 : index
    %11 = vector.load %arg5[%c0_9, %c0_10] : memref<1x512xf32, #tpu.memory_space<vmem>>, vector<1x512xf32>
    %12 = vector.broadcast %11 : vector<1x512xf32> to vector<2x512xf32>
    %13 = arith.addf %10, %12 : vector<2x512xf32>
    %cst_11 = arith.constant 0.000000e+00 : f32
    %14 = vector.broadcast %cst_11 : f32 to vector<2x512xf32>
    %15 = arith.maximumf %13, %14 : vector<2x512xf32>
    %16 = arith.truncf %15 : vector<2x512xf32> to vector<2x512xbf16>
    %c0_12 = arith.constant 0 : index
    %c0_13 = arith.constant 0 : index
    %17 = vector.load %arg6[%c0_12, %c0_13] : memref<512x256xbf16, #tpu.memory_space<vmem>>, vector<512x256xbf16>
    %cst_14 = arith.constant dense<0.000000e+00> : vector<2x256xf32>
    %18 = tpu.matmul %16, %17, %cst_14 {dimension_numbers = #tpu.dot_dimension_numbers<[1], [0], [0], [1], [0, 0, 1, 1], [], []>} : vector<2x512xbf16>, vector<512x256xbf16>, vector<2x256xf32> -> vector<2x256xf32>
    %c0_15 = arith.constant 0 : index
    %c0_16 = arith.constant 0 : index
    %19 = vector.load %arg7[%c0_15, %c0_16] : memref<1x256xf32, #tpu.memory_space<vmem>>, vector<1x256xf32>
    %20 = vector.broadcast %19 : vector<1x256xf32> to vector<2x256xf32>
    %21 = arith.addf %18, %20 : vector<2x256xf32>
    %22 = arith.truncf %21 : vector<2x256xf32> to vector<2x256xbf16>
    %c0_17 = arith.constant 0 : index
    %c0_18 = arith.constant 0 : index
    %23 = vector.load %arg8[%c0_17, %c0_18] : memref<2x256xbf16, #tpu.memory_space<vmem>>, vector<2x256xbf16>
    tpu.vector_store %arg8[%c0_17, %c0_18], %22 {strides = array<i32>} : memref<2x256xbf16, #tpu.memory_space<vmem>>, vector<2x256xbf16>,
    return
  }
  func.func @transform_0(%arg0: i32) -> (i32, i32) {
    %c0_i32 = arith.constant 0 : i32
    %c0_i32_0 = arith.constant 0 : i32
    return %arg0, %c0_i32 : i32, i32
  }
  func.func @transform_1(%arg0: i32) -> (i32, i32) {
    %c0_i32 = arith.constant 0 : i32
    %c0_i32_0 = arith.constant 0 : i32
    %c0_i32_1 = arith.constant 0 : i32
    return %c0_i32, %c0_i32_0 : i32, i32
  }
  func.func @transform_2(%arg0: i32) -> (i32, i32) {
    %c0_i32 = arith.constant 0 : i32
    %c0_i32_0 = arith.constant 0 : i32
    %c0_i32_1 = arith.constant 0 : i32
    return %c0_i32, %c0_i32_0 : i32, i32
  }
  func.func @transform_3(%arg0: i32) -> (i32, i32) {
    %c0_i32 = arith.constant 0 : i32
    %c0_i32_0 = arith.constant 0 : i32
    %c0_i32_1 = arith.constant 0 : i32
    return %c0_i32, %c0_i32_0 : i32, i32
  }
  func.func @transform_4(%arg0: i32) -> (i32, i32) {
    %c0_i32 = arith.constant 0 : i32
    %c0_i32_0 = arith.constant 0 : i32
    %c0_i32_1 = arith.constant 0 : i32
    return %c0_i32, %c0_i32_0 : i32, i32
  }
  func.func @transform_5(%arg0: i32) -> (i32, i32) {
    %c0_i32 = arith.constant 0 : i32
    %c0_i32_0 = arith.constant 0 : i32
    %c0_i32_1 = arith.constant 0 : i32
    return %c0_i32, %c0_i32_0 : i32, i32
  }
  func.func @transform_6(%arg0: i32) -> (i32, i32) {
    %c0_i32 = arith.constant 0 : i32
    %c0_i32_0 = arith.constant 0 : i32
    %c0_i32_1 = arith.constant 0 : i32
    return %c0_i32, %c0_i32_0 : i32, i32
  }
  func.func @transform_7(%arg0: i32) -> (i32, i32) {
    %c0_i32 = arith.constant 0 : i32
    %c0_i32_0 = arith.constant 0 : i32
    return %arg0, %c0_i32 : i32, i32
  }
}

</mosaic_0001>

<bundles_post_ra>
// kernel: tpu_custom_call.1
= control target key start
LH: loop header
LB: loop body
LE: loop exit
PB: predicated region body
PF: predicated region fallthrough
CT: control target
= control target key end

     0   :  { %12 = vsyncpa [#allocation3], 0  ;;  %s1826_s0 = inlined_call_operand.hbm [shape: bf16[2,128], index: 0, kind: input, shape index: {}]   ;;  %s1827_s1 = inlined_call_operand.hbm [shape: bf16[128,256], index: 1, kind: input, shape index: {}]   ;;  %s1828_s2 = inlined_call_operand.vmem [shape: f32[1,256], index: 2, kind: input, shape index: {}]   ;;  %s1829_s3 = inlined_call_operand.hbm [shape: bf16[256,512], index: 3, kind: input, shape index: {}]   ;;  %s1830_s4 = inlined_call_operand.vmem [shape: f32[1,512], index: 4, kind: input, shape index: {}]   ;;  %s1831_s5 = inlined_call_operand.hbm [shape: bf16[512,256], index: 5, kind: input, shape index: {}]   ;;  %s1832_s6 = inlined_call_operand.vmem [shape: f32[1,256], index: 6, kind: input, shape index: {}]   ;;  %s1833_s7 = inlined_call_operand.hbm [shape: bf16[2,256], index: 7, kind: output, shape index: {}]  }
   0x1   :  { %13 = vsyncpa [#allocation6], 0 }
   0x2   :  { %14 = vsyncpa [#allocation9], 0 }
   0x3   :  { %15 = vsyncpa [#allocation4], 0  ;;  %s1728_s24 = smov [#allocation5]  }
   0x4   :  { %s31_s25 = sshll.u32 %s1728_s24, 4  ;;  %s32_s25 = int_to_ptr.vmem [resolvable:$true] %s31_s25 }
   0x5   :  { %s1628_s26 = scalar_lea.vmem %s32_s25, 2048  ;;  %p1633_p1 = scmp.lt.s32.totalorder %s32_s25, %s32_s25 }
   0x6   :  { %p1629_p0 = scmp.ne.s32.totalorder %s32_s25, %s1628_s26  ;;  %p1634_p2 = scmp.lt.s32.totalorder %s1628_s26, %s1628_s26 }
   0x8   :  { %p1635_p3 = por %p1634_p2, %p1633_p1 }
   0xa   :  { %p1636_p4 = pnand %p1635_p3, %p1629_p0 }
   0xc   :  { %1639 = shalt.err (!%p1636_p4)
}
   0xd   :  { %s1729_s27 = smov 128   ;;  %s1730_s28 = smov 8  }
   0xe   :  { %37 = dma.hbm_to_vmem [thread:$0]  %s1827_s1, 2048, %s32_s25, [#allocation6], %s1729_s27, %s1729_s27, %s1730_s28  }
   0xf   :  { %s1731_s8 = smov [#allocation2]   ;;  %s1732_s10 = smov [#allocation7]  }
  0x10   :  { %s22_s9 = sshll.u32 %s1731_s8, 4  ;;  %s45_s11 = sshll.u32 %s1732_s10, 4  ;;  %s23_s9 = int_to_ptr.vmem [resolvable:$true] %s22_s9  ;;  %s46_s11 = int_to_ptr.vmem [resolvable:$true] %s45_s11 }
  0x11   :  { %s1648_s12 = scalar_lea.vmem %s23_s9, 16  ;;  %s1652_s13 = scalar_lea.vmem %s23_s9, 32 }
  0x12   :  { %p1649_p5 = scmp.ne.s32.totalorder %s23_s9, %s1648_s12  ;;  %p1653_p6 = scmp.lt.s32.totalorder %s23_s9, %s23_s9 }
  0x13   :  { %p1654_p7 = scmp.lt.s32.totalorder %s1652_s13, %s1648_s12 }
  0x15   :  { %p1655_p8 = por %p1654_p7, %p1653_p6 }
  0x17   :  { %p1656_p9 = pnand %p1655_p8, %p1649_p5 }
  0x19   :  { %1659 = shalt.err (!%p1656_p9)
}
  0x1a   :  { %25 = dma.hbm_to_vmem [thread:$0]  %s1826_s0, 16, %s23_s9, [#allocation3]  }
  0x1b   :  { %s1668_s16 = scalar_lea.vmem %s46_s11, 8192  ;;  %p1673_p11 = scmp.lt.s32.totalorder %s46_s11, %s46_s11 }
  0x1c   :  { %p1669_p10 = scmp.ne.s32.totalorder %s46_s11, %s1668_s16  ;;  %p1674_p12 = scmp.lt.s32.totalorder %s1668_s16, %s1668_s16 }
  0x1e   :  { %p1675_p13 = por %p1674_p12, %p1673_p11 }
  0x20   :  { %p1676_p0 = pnand %p1675_p13, %p1669_p10 }
  0x22   :  { %1679 = shalt.err (!%p1676_p0)
}
  0x23   :  { %s1733_s1 = smov 256   ;;  %s1734_s17 = smov 16  }
  0x24   :  { %51 = dma.hbm_to_vmem [thread:$0]  %s1829_s3, 8192, %s46_s11, [#allocation6], %s1733_s1, %s1733_s1, %s1734_s17  }
  0x25   :  { %s1735_s20 = smov [#allocation8]  }
  0x26   :  { %s59_s21 = sshll.u32 %s1735_s20, 4  ;;  %s60_s21 = int_to_ptr.vmem [resolvable:$true] %s59_s21 }
  0x27   :  { %s1688_s22 = scalar_lea.vmem %s60_s21, 8192  ;;  %p1693_p2 = scmp.lt.s32.totalorder %s60_s21, %s60_s21 }
  0x28   :  { %p1689_p1 = scmp.ne.s32.totalorder %s60_s21, %s1688_s22  ;;  %p1694_p3 = scmp.lt.s32.totalorder %s1688_s22, %s1688_s22 }
  0x2a   :  { %p1695_p4 = por %p1694_p3, %p1693_p2 }
  0x2c   :  { %p1696_p5 = pnand %p1695_p4, %p1689_p1 }
  0x2e   :  { %1699 = shalt.err (!%p1696_p5)
}
  0x2f   :  { %65 = dma.hbm_to_vmem [thread:$0]  %s1831_s5, 8192, %s60_s21, [#allocation9], %s1729_s27, %s1729_s27, %s1730_s28  }
  0x30   :  { %1720 = dma.done.wait [#allocation3], 16  }
  0x31   :  { %1721 = vsyncadd [#allocation3], 4294967280 }
  0x32   :  { %1722 = dma.done.wait [#allocation6], 10240  }
  0x33   :  { %1723 = vsyncadd [#allocation6], 4294957056 }
  0x34   :  { %1724 = dma.done.wait [#allocation9], 8192  }
  0x35   :  { %1725 = vsyncadd [#allocation9], 4294959104  ;;  %v1736_v0 = vmov 0   ;;  %v1404_v1 = vld [vmem:[#allocation5 + $0x74] ss:$8 sps:$4 sm:$0xff]  }
  0x36   :  { %222 = vmatprep.mubr.bf16.mxu0 %v1736_v0  ;;  %v1406_v2 = vld [vmem:[#allocation5 + $0x70] ss:$8 sps:$4 sm:$0xff]   ;;  %190 = vmatprep.subr.bf16.mxu0 %v1404_v1  ;;  %v1407_v3 = vld [vmem:[#allocation5 + $0x64] ss:$8 sps:$4 sm:$0xff]   ;;  %v1409_v4 = vld [vmem:[#allocation5 + $0x60] ss:$8 sps:$4 sm:$0xff]  }
  0x37   :  { %191 = vmatpush1.bf16.msra.mxu0 %v1406_v2  ;;  %v1410_v5 = vld [vmem:[#allocation5 + $0x54] ss:$8 sps:$4 sm:$0xff]   ;;  %v1412_v6 = vld [vmem:[#allocation5 + $0x50] ss:$8 sps:$4 sm:$0xff]   ;;  %v1413_v7 = vld [vmem:[#allocation5 + $0x44] ss:$8 sps:$4 sm:$0xff]  }
  0x38   :  { %192 = vmatprep.subr.bf16.mxu0 %v1407_v3  ;;  %v1415_v8 = vld [vmem:[#allocation5 + $0x40] ss:$8 sps:$4 sm:$0xff]   ;;  %v1428_v9 = vld [vmem:[#allocation7 + $0xe4] ss:$16 sps:$4 sm:$0xff]   ;;  %v1418_v13 = vld [vmem:[#allocation5 + $0x30] ss:$8 sps:$4 sm:$0xff]  }
  0x39   :  { %v1416_v10 = vld [vmem:[#allocation5 + $0x34] ss:$8 sps:$4 sm:$0xff]   ;;  %641 = vmatprep.subr.bf16.mxu1 %v1428_v9  ;;  %v1433_v11 = vld [vmem:[#allocation7 + $0xe0] ss:$16 sps:$4 sm:$0xff]   ;;  %v1419_v14 = vld [vmem:[#allocation5 + $0x24] ss:$8 sps:$4 sm:$0xff]  }
  0x3a   :  { %v1434_v12 = vld [vmem:[#allocation7 + $0xc4] ss:$16 sps:$4 sm:$0xff]   ;;  %642 = vmatpush1.bf16.msra.mxu1 %v1433_v11  ;;  %v1439_v15 = vld [vmem:[#allocation7 + $0xc0] ss:$16 sps:$4 sm:$0xff]   ;;  %v1432_v26 = vld [vmem:[#allocation7 + $0xec] ss:$16 sps:$4 sm:$0xff]  }
  0x3b   :  { %193 = vmatpush1.bf16.msra.mxu0 %v1409_v4  ;;  %643 = vmatprep.subr.bf16.mxu1 %v1434_v12  ;;  %v1440_v16 = vld [vmem:[#allocation7 + $0xa4] ss:$16 sps:$4 sm:$0xff]   ;;  %v1421_v17 = vld [vmem:[#allocation5 + $0x20] ss:$8 sps:$4 sm:$0xff]   ;;  %v1424_v21 = vld [vmem:[#allocation5 + $0x10] ss:$8 sps:$4 sm:$0xff]  }
  0x3c   :  { %194 = vmatprep.subr.bf16.mxu0 %v1410_v5  ;;  %v1422_v18 = vld [vmem:[#allocation5 + $0x14] ss:$8 sps:$4 sm:$0xff]   ;;  %v1445_v19 = vld [vmem:[#allocation7 + $0xa0] ss:$16 sps:$4 sm:$0xff]   ;;  %v1425_v22 = vld [vmem:[#allocation5 + $0x4] ss:$8 sps:$4 sm:$0xff]  }
  0x3d   :  { %v1446_v20 = vld [vmem:[#allocation7 + $0x84] ss:$16 sps:$4 sm:$0xff]   ;;  %v1451_v23 = vld [vmem:[#allocation7 + $0x80] ss:$16 sps:$4 sm:$0xff]   ;;  %v81_v29 = vld [vmem:[#allocation2] sm:$0x1] }
  0x3e   :  { %644 = vmatpush1.bf16.msra.mxu1 %v1439_v15  ;;  %v1452_v24 = vld [vmem:[#allocation7 + $0x64] ss:$16 sps:$4 sm:$0xff]   ;;  %v1427_v25 = vld [vmem:[#allocation5] ss:$8 sps:$4 sm:$0xff]   ;;  %v1438_v31 = vld [vmem:[#allocation7 + $0xcc] ss:$16 sps:$4 sm:$0xff]  }
  0x3f   :  { %195 = vmatpush1.bf16.msra.mxu0 %v1412_v6  ;;  %645 = vmatprep.subr.bf16.mxu1 %v1440_v16  ;;  %v1457_v27 = vld [vmem:[#allocation7 + $0x60] ss:$16 sps:$4 sm:$0xff]   ;;  %v1458_v28 = vld [vmem:[#allocation7 + $0x44] ss:$16 sps:$4 sm:$0xff]   ;;  %v1430_v30 = vld [vmem:[#allocation7 + $0xe8] ss:$16 sps:$4 sm:$0xff]  }
  0x40   :  { %196 = vmatprep.subr.bf16.mxu0 %v1413_v7  ;;  %v1463_v32 = vld [vmem:[#allocation7 + $0x40] ss:$16 sps:$4 sm:$0xff]   ;;  %v1464_v33 = vld [vmem:[#allocation7 + $0x24] ss:$16 sps:$4 sm:$0xff]   ;;  %v1436_v34 = vld [vmem:[#allocation7 + $0xc8] ss:$16 sps:$4 sm:$0xff]  }
  0x41   :  { %v1444_v35 = vld [vmem:[#allocation7 + $0xac] ss:$16 sps:$4 sm:$0xff]   ;;  %v1469_v36 = vld [vmem:[#allocation7 + $0x20] ss:$16 sps:$4 sm:$0xff]   ;;  %v1470_v37 = vld [vmem:[#allocation7 + $0x4] ss:$16 sps:$4 sm:$0xff]  }
  0x42   :  { %646 = vmatpush1.bf16.msra.mxu1 %v1445_v19  ;;  %v1442_v38 = vld [vmem:[#allocation7 + $0xa8] ss:$16 sps:$4 sm:$0xff]   ;;  %v1450_v39 = vld [vmem:[#allocation7 + $0x8c] ss:$16 sps:$4 sm:$0xff]   ;;  %v1475_v40 = vld [vmem:[#allocation7] ss:$16 sps:$4 sm:$0xff]  }
  0x43   :  { %197 = vmatpush1.bf16.msra.mxu0 %v1415_v8  ;;  %647 = vmatprep.subr.bf16.mxu1 %v1446_v20  ;;  %v1476_v41 = vld [vmem:[#allocation7 + $0x1e4] ss:$16 sps:$4 sm:$0xff]   ;;  %v1448_v42 = vld [vmem:[#allocation7 + $0x88] ss:$16 sps:$4 sm:$0xff]   ;;  %v1456_v43 = vld [vmem:[#allocation7 + $0x6c] ss:$16 sps:$4 sm:$0xff]   ;;  %v100_v20 = vlaneseq }
  0x44   :  { %198 = vmatprep.subr.bf16.mxu0 %v1416_v10  ;;  %v1481_v44 = vld [vmem:[#allocation7 + $0x1e0] ss:$16 sps:$4 sm:$0xff]   ;;  %v1482_v45 = vld [vmem:[#allocation7 + $0x1c4] ss:$16 sps:$4 sm:$0xff]   ;;  %v1454_v46 = vld [vmem:[#allocation7 + $0x68] ss:$16 sps:$4 sm:$0xff]  }
  0x45   :  { %v1487_v47 = vld [vmem:[#allocation7 + $0x1c0] ss:$16 sps:$4 sm:$0xff]   ;;  %v1462_v48 = vld [vmem:[#allocation7 + $0x4c] ss:$16 sps:$4 sm:$0xff]   ;;  %v1488_v49 = vld [vmem:[#allocation7 + $0x1a4] ss:$16 sps:$4 sm:$0xff]  }
  0x46   :  { %648 = vmatpush1.bf16.msra.mxu1 %v1451_v23  ;;  %v1460_v50 = vld [vmem:[#allocation7 + $0x48] ss:$16 sps:$4 sm:$0xff]   ;;  %v1493_v51 = vld [vmem:[#allocation7 + $0x1a0] ss:$16 sps:$4 sm:$0xff]   ;;  %v1468_v52 = vld [vmem:[#allocation7 + $0x2c] ss:$16 sps:$4 sm:$0xff]  }
  0x47   :  { %199 = vmatpush1.bf16.msra.mxu0 %v1418_v13  ;;  %649 = vmatprep.subr.bf16.mxu1 %v1452_v24  ;;  %v1494_v53 = vld [vmem:[#allocation7 + $0x184] ss:$16 sps:$4 sm:$0xff]   ;;  %v1466_v54 = vld [vmem:[#allocation7 + $0x28] ss:$16 sps:$4 sm:$0xff]   ;;  %v1499_v55 = vld [vmem:[#allocation7 + $0x180] ss:$16 sps:$4 sm:$0xff]  }
  0x48   :  { %200 = vmatprep.subr.bf16.mxu0 %v1419_v14  ;;  %v1474_v56 = vld [vmem:[#allocation7 + $0xc] ss:$16 sps:$4 sm:$0xff]   ;;  %v1500_v57 = vld [vmem:[#allocation7 + $0x164] ss:$16 sps:$4 sm:$0xff]   ;;  %v1472_v58 = vld [vmem:[#allocation7 + $0x8] ss:$16 sps:$4 sm:$0xff]  }
  0x49   :  { %v1505_v59 = vld [vmem:[#allocation7 + $0x160] ss:$16 sps:$4 sm:$0xff]   ;;  %v1480_v60 = vld [vmem:[#allocation7 + $0x1ec] ss:$16 sps:$4 sm:$0xff]   ;;  %v1506_v61 = vld [vmem:[#allocation7 + $0x144] ss:$16 sps:$4 sm:$0xff]  }
  0x4a   :  { %650 = vmatpush1.bf16.msra.mxu1 %v1457_v27  ;;  %v1478_v62 = vld [vmem:[#allocation7 + $0x1e8] ss:$16 sps:$4 sm:$0xff]   ;;  %v1511_v63 = vld [vmem:[#allocation7 + $0x140] ss:$16 sps:$4 sm:$0xff]   ;;  %v1486_v0 = vld [vmem:[#allocation7 + $0x1cc] ss:$16 sps:$4 sm:$0xff]  }
  0x4b   :  { %201 = vmatpush1.bf16.msra.mxu0 %v1421_v17  ;;  %651 = vmatprep.subr.bf16.mxu1 %v1458_v28  ;;  %v1484_v1 = vld [vmem:[#allocation7 + $0x1c8] ss:$16 sps:$4 sm:$0xff]   ;;  %v1492_v2 = vld [vmem:[#allocation7 + $0x1ac] ss:$16 sps:$4 sm:$0xff]   ;;  %v1512_v10 = vld [vmem:[#allocation7 + $0x124] ss:$16 sps:$4 sm:$0xff]  }
  0x4c   :  { %202 = vmatprep.subr.bf16.mxu0 %v1422_v18  ;;  %v1490_v3 = vld [vmem:[#allocation7 + $0x1a8] ss:$16 sps:$4 sm:$0xff]   ;;  %v1498_v4 = vld [vmem:[#allocation7 + $0x18c] ss:$16 sps:$4 sm:$0xff]   ;;  %v1517_v13 = vld [vmem:[#allocation7 + $0x120] ss:$16 sps:$4 sm:$0xff]  }
  0x4d   :  { %v1496_v5 = vld [vmem:[#allocation7 + $0x188] ss:$16 sps:$4 sm:$0xff]   ;;  %v1504_v6 = vld [vmem:[#allocation7 + $0x16c] ss:$16 sps:$4 sm:$0xff]   ;;  %v1518_v14 = vld [vmem:[#allocation7 + $0x104] ss:$16 sps:$4 sm:$0xff]  }
  0x4e   :  { %652 = vmatpush1.bf16.msra.mxu1 %v1463_v32  ;;  %v1502_v7 = vld [vmem:[#allocation7 + $0x168] ss:$16 sps:$4 sm:$0xff]   ;;  %v1510_v8 = vld [vmem:[#allocation7 + $0x14c] ss:$16 sps:$4 sm:$0xff]   ;;  %v1523_v17 = vld [vmem:[#allocation7 + $0x100] ss:$16 sps:$4 sm:$0xff]  }
  0x4f   :  { %203 = vmatpush1.bf16.msra.mxu0 %v1424_v21  ;;  %653 = vmatprep.subr.bf16.mxu1 %v1464_v33  ;;  %v1508_v9 = vld [vmem:[#allocation7 + $0x148] ss:$16 sps:$4 sm:$0xff]   ;;  %v1516_v11 = vld [vmem:[#allocation7 + $0x12c] ss:$16 sps:$4 sm:$0xff]   ;;  %v1797_v21 = vshrl.u32 %v100_v20, 7 }
  0x50   :  { %204 = vmatprep.subr.bf16.mxu0 %v1425_v22  ;;  %v1514_v12 = vld [vmem:[#allocation7 + $0x128] ss:$16 sps:$4 sm:$0xff]   ;;  %v1522_v15 = vld [vmem:[#allocation7 + $0x10c] ss:$16 sps:$4 sm:$0xff]  }
  0x51   :  { %v1520_v16 = vld [vmem:[#allocation7 + $0x108] ss:$16 sps:$4 sm:$0xff]   ;;  %v1526_v18 = vld [vmem:[#allocation8 + $0x74] ss:$8 sps:$4 sm:$0xff]   ;;  %v1800_v22 = vsub.s32 0, %v1797_v21  ;;  %v1806_v24 = vsub.s32 1, %v1797_v21 }
  0x52   :  { %654 = vmatpush1.bf16.msra.mxu1 %v1469_v36  ;;  %v1529_v19 = vld [vmem:[#allocation8 + $0x174] ss:$8 sps:$4 sm:$0xff]   ;;  %v1524_v36 = vld [vmem:[#allocation8 + $0x70] ss:$8 sps:$4 sm:$0xff]  }
  0x53   :  { %205 = vmatpush1.bf16.msra.mxu0 %v1427_v25  ;;  %655 = vmatprep.subr.bf16.mxu1 %v1470_v37  ;;  %v98_v23 = vld [vmem:[%s1828_s2] sm:$0x3]  ;;  %v1527_v37 = vld [vmem:[#allocation8 + $0x170] ss:$8 sps:$4 sm:$0xff]  }
  0x54   :  { %682 = vmatprep.subr.bf16.mxu0 %v1432_v26  ;;  %v103_v25 = vrot.slane %v98_v23, %v1800_v22  ;;  %v107_v26 = vrot.slane %v98_v23, %v1806_v24  ;;  %v1601_v20 = vld [vmem:[#allocation8 + $0x1b4] ss:$8 sps:$4 sm:$0xff]   ;;  %v1596_v23 = vld [vmem:[#allocation8 + $0xb0] ss:$8 sps:$4 sm:$0xff]  }
  0x56   :  { %223 = vmatmul.mubr.bf16.vlgmr.msra.gmra.mxu0 %v81_v29  ;;  %656 = vmatpush1.bf16.msra.mxu1 %v1475_v40  ;;  %v1535_v40 = vld [vmem:[#allocation8 + $0x164] ss:$8 sps:$4 sm:$0xff]  }
  0x57   :  { %683 = vmatpush1.bf16.msra.mxu0 %v1430_v30  ;;  %657 = vmatprep.subr.bf16.mxu1 %v1476_v41  ;;  %v1530_v41 = vld [vmem:[#allocation8 + $0x60] ss:$8 sps:$4 sm:$0xff]  }
  0x58   :  { %684 = vmatprep.subr.bf16.mxu0 %v1438_v31 }
  0x5a   :  { %658 = vmatpush2.bf16.msra.mxu1 %v1481_v44  ;;  %v1541_v44 = vld [vmem:[#allocation8 + $0x154] ss:$8 sps:$4 sm:$0xff]  }
  0x5b   :  { %685 = vmatpush1.bf16.msra.mxu0 %v1436_v34  ;;  %659 = vmatprep.subr.bf16.mxu1 %v1482_v45  ;;  %v1536_v45 = vld [vmem:[#allocation8 + $0x50] ss:$8 sps:$4 sm:$0xff]  }
  0x5c   :  { %686 = vmatprep.subr.bf16.mxu0 %v1444_v35 }
  0x5e   :  { %660 = vmatpush2.bf16.msra.mxu1 %v1487_v47  ;;  %v1544_v47 = vld [vmem:[#allocation8 + $0x44] ss:$8 sps:$4 sm:$0xff]  }
  0x5f   :  { %687 = vmatpush1.bf16.msra.mxu0 %v1442_v38  ;;  %661 = vmatprep.subr.bf16.mxu1 %v1488_v49  ;;  %v1542_v49 = vld [vmem:[#allocation8 + $0x40] ss:$8 sps:$4 sm:$0xff]  }
  0x60   :  { %688 = vmatprep.subr.bf16.mxu0 %v1450_v39  ;;  %v1532_v39 = vld [vmem:[#allocation8 + $0x64] ss:$8 sps:$4 sm:$0xff]  }
  0x62   :  { %662 = vmatpush2.bf16.msra.mxu1 %v1493_v51  ;;  %v1550_v51 = vld [vmem:[#allocation8 + $0x34] ss:$8 sps:$4 sm:$0xff]  }
  0x63   :  { %689 = vmatpush1.bf16.msra.mxu0 %v1448_v42  ;;  %663 = vmatprep.subr.bf16.mxu1 %v1494_v53  ;;  %v1533_v42 = vld [vmem:[#allocation8 + $0x160] ss:$8 sps:$4 sm:$0xff]   ;;  %v1548_v53 = vld [vmem:[#allocation8 + $0x30] ss:$8 sps:$4 sm:$0xff]  }
  0x64   :  { %690 = vmatprep.subr.bf16.mxu0 %v1456_v43  ;;  %v1538_v43 = vld [vmem:[#allocation8 + $0x54] ss:$8 sps:$4 sm:$0xff]  }
  0x66   :  { %664 = vmatpush2.bf16.msra.mxu1 %v1499_v55  ;;  %v1556_v55 = vld [vmem:[#allocation8 + $0x24] ss:$8 sps:$4 sm:$0xff]  }
  0x67   :  { %691 = vmatpush1.bf16.msra.mxu0 %v1454_v46  ;;  %665 = vmatprep.subr.bf16.mxu1 %v1500_v57  ;;  %v1539_v46 = vld [vmem:[#allocation8 + $0x150] ss:$8 sps:$4 sm:$0xff]   ;;  %v1554_v57 = vld [vmem:[#allocation8 + $0x20] ss:$8 sps:$4 sm:$0xff]  }
  0x68   :  { %692 = vmatprep.subr.bf16.mxu0 %v1462_v48  ;;  %v1547_v48 = vld [vmem:[#allocation8 + $0x144] ss:$8 sps:$4 sm:$0xff]  }
  0x6a   :  { %666 = vmatpush2.bf16.msra.mxu1 %v1505_v59  ;;  %v1562_v59 = vld [vmem:[#allocation8 + $0x14] ss:$8 sps:$4 sm:$0xff]  }
  0x6b   :  { %693 = vmatpush1.bf16.msra.mxu0 %v1460_v50  ;;  %667 = vmatprep.subr.bf16.mxu1 %v1506_v61  ;;  %v1545_v50 = vld [vmem:[#allocation8 + $0x140] ss:$8 sps:$4 sm:$0xff]   ;;  %v1560_v61 = vld [vmem:[#allocation8 + $0x10] ss:$8 sps:$4 sm:$0xff]  }
  0x6c   :  { %694 = vmatprep.subr.bf16.mxu0 %v1468_v52  ;;  %v1553_v52 = vld [vmem:[#allocation8 + $0x134] ss:$8 sps:$4 sm:$0xff]  }
  0x6e   :  { %668 = vmatpush2.bf16.msra.mxu1 %v1511_v63  ;;  %v1568_v63 = vld [vmem:[#allocation8 + $0x4] ss:$8 sps:$4 sm:$0xff]  }
  0x6f   :  { %695 = vmatpush1.bf16.msra.mxu0 %v1466_v54  ;;  %669 = vmatprep.subr.bf16.mxu1 %v1512_v10  ;;  %v1551_v54 = vld [vmem:[#allocation8 + $0x130] ss:$8 sps:$4 sm:$0xff]   ;;  %v1581_v10 = vld [vmem:[#allocation8 + $0x1e0] ss:$8 sps:$4 sm:$0xff]  }
  0x70   :  { %696 = vmatprep.subr.bf16.mxu0 %v1474_v56  ;;  %v1559_v56 = vld [vmem:[#allocation8 + $0x124] ss:$8 sps:$4 sm:$0xff]  }
  0x72   :  { %670 = vmatpush2.bf16.msra.mxu1 %v1517_v13  ;;  %v1584_v13 = vld [vmem:[#allocation8 + $0xd0] ss:$8 sps:$4 sm:$0xff]  }
  0x73   :  { %697 = vmatpush1.bf16.msra.mxu0 %v1472_v58  ;;  %671 = vmatprep.subr.bf16.mxu1 %v1518_v14  ;;  %v1557_v58 = vld [vmem:[#allocation8 + $0x120] ss:$8 sps:$4 sm:$0xff]   ;;  %v1587_v14 = vld [vmem:[#allocation8 + $0x1d0] ss:$8 sps:$4 sm:$0xff]  }
  0x74   :  { %698 = vmatprep.subr.bf16.mxu0 %v1480_v60  ;;  %v1565_v60 = vld [vmem:[#allocation8 + $0x114] ss:$8 sps:$4 sm:$0xff]  }
  0x76   :  { %672 = vmatpush2.bf16.msra.mxu1 %v1523_v17  ;;  %v1590_v17 = vld [vmem:[#allocation8 + $0xc0] ss:$8 sps:$4 sm:$0xff]  }
  0x77   :  { %699 = vmatpush2.bf16.msra.mxu0 %v1478_v62  ;;  %1127 = vmatprep.subr.bf16.mxu1 %v1526_v18  ;;  %v1563_v62 = vld [vmem:[#allocation8 + $0x110] ss:$8 sps:$4 sm:$0xff]   ;;  %v1593_v18 = vld [vmem:[#allocation8 + $0x1c0] ss:$8 sps:$4 sm:$0xff]  }
  0x78   :  { %700 = vmatprep.subr.bf16.mxu0 %v1486_v0  ;;  %v1571_v0 = vld [vmem:[#allocation8 + $0x104] ss:$8 sps:$4 sm:$0xff]  }
  0x7b   :  { %701 = vmatpush2.bf16.msra.mxu0 %v1484_v1  ;;  %v1566_v1 = vld [vmem:[#allocation8] ss:$8 sps:$4 sm:$0xff]  }
  0x7c   :  { %702 = vmatprep.subr.bf16.mxu0 %v1492_v2  ;;  %v1569_v2 = vld [vmem:[#allocation8 + $0x100] ss:$8 sps:$4 sm:$0xff]  }
  0x7f   :  { %703 = vmatpush2.bf16.msra.mxu0 %v1490_v3  ;;  %v1574_v3 = vld [vmem:[#allocation8 + $0xf4] ss:$8 sps:$4 sm:$0xff]  }
  0x80   :  { %704 = vmatprep.subr.bf16.mxu0 %v1498_v4  ;;  %v1577_v4 = vld [vmem:[#allocation8 + $0x1f4] ss:$8 sps:$4 sm:$0xff]  }
  0x83   :  { %705 = vmatpush2.bf16.msra.mxu0 %v1496_v5  ;;  %v1572_v5 = vld [vmem:[#allocation8 + $0xf0] ss:$8 sps:$4 sm:$0xff]  }
  0x84   :  { %706 = vmatprep.subr.bf16.mxu0 %v1504_v6  ;;  %v1575_v6 = vld [vmem:[#allocation8 + $0x1f0] ss:$8 sps:$4 sm:$0xff]  }
  0x87   :  { %707 = vmatpush2.bf16.msra.mxu0 %v1502_v7  ;;  %v1580_v7 = vld [vmem:[#allocation8 + $0xe4] ss:$8 sps:$4 sm:$0xff]  }
  0x88   :  { %708 = vmatprep.subr.bf16.mxu0 %v1510_v8  ;;  %v1583_v8 = vld [vmem:[#allocation8 + $0x1e4] ss:$8 sps:$4 sm:$0xff]  }
  0x8b   :  { %709 = vmatpush2.bf16.msra.mxu0 %v1508_v9  ;;  %v1578_v9 = vld [vmem:[#allocation8 + $0xe0] ss:$8 sps:$4 sm:$0xff]  }
  0x8c   :  { %710 = vmatprep.subr.bf16.mxu0 %v1516_v11  ;;  %v1586_v11 = vld [vmem:[#allocation8 + $0xd4] ss:$8 sps:$4 sm:$0xff]  }
  0x8f   :  { %711 = vmatpush2.bf16.msra.mxu0 %v1514_v12  ;;  %v1589_v12 = vld [vmem:[#allocation8 + $0x1d4] ss:$8 sps:$4 sm:$0xff]  }
  0x90   :  { %712 = vmatprep.subr.bf16.mxu0 %v1522_v15  ;;  %v1592_v15 = vld [vmem:[#allocation8 + $0xc4] ss:$8 sps:$4 sm:$0xff]  }
  0x93   :  { %713 = vmatpush2.bf16.msra.mxu0 %v1520_v16  ;;  %v1595_v16 = vld [vmem:[#allocation8 + $0x1c4] ss:$8 sps:$4 sm:$0xff]  }
  0x94   :  { %1168 = vmatprep.subr.bf16.mxu0 %v1529_v19  ;;  %v1598_v19 = vld [vmem:[#allocation8 + $0xb4] ss:$8 sps:$4 sm:$0xff]  }
 0x116   :  { %v224_v27 = vpop.f32.mrf.mxu0 }
 0x117   :  { %v225_v28 = vadd.f32 %v224_v27, %v103_v25  ;;  %v1599_v25 = vld [vmem:[#allocation8 + $0x1b0] ss:$8 sps:$4 sm:$0xff]   ;;  %v1607_v27 = vld [vmem:[#allocation8 + $0x1a4] ss:$8 sps:$4 sm:$0xff]  }
 0x118   :  { %v226_v29 = vpop.f32.mrf.mxu0 }
 0x119   :  { %v227_v30 = vadd.f32 %v226_v29, %v107_v26  ;;  %v231_v31 = vmax.f32 %v225_v28, 0.0  ;;  %v1604_v26 = vld [vmem:[#allocation8 + $0xa4] ss:$8 sps:$4 sm:$0xff]   ;;  %v1602_v28 = vld [vmem:[#allocation8 + $0xa0] ss:$8 sps:$4 sm:$0xff]  }
 0x11a   :  { %v228_v32 = vpop.f32.mrf.mxu0  ;;  %v1605_v29 = vld [vmem:[#allocation8 + $0x1a0] ss:$8 sps:$4 sm:$0xff]  }
 0x11b   :  { %v232_v33 = vmax.f32 %v227_v30, 0.0  ;;  %v233_v38 = vpack.c.bf16 %v231_v31, %v231_v31  ;;  %v1610_v30 = vld [vmem:[#allocation8 + $0x94] ss:$8 sps:$4 sm:$0xff]   ;;  %v1608_v32 = vld [vmem:[#allocation8 + $0x90] ss:$8 sps:$4 sm:$0xff]  }
 0x11c   :  { %v229_v34 = vpop.f32.mrf.mxu0  ;;  %v1613_v31 = vld [vmem:[#allocation8 + $0x194] ss:$8 sps:$4 sm:$0xff]  }
 0x11d   :  { %v234_v35 = vpack.c.bf16 %v232_v33, %v232_v33  ;;  %v1611_v33 = vld [vmem:[#allocation8 + $0x190] ss:$8 sps:$4 sm:$0xff]   ;;  %v1616_v34 = vld [vmem:[#allocation8 + $0x84] ss:$8 sps:$4 sm:$0xff]  }
 0x11f   :  { %673 = vmatprep.mubr.bf16.mxu1 %v234_v35  ;;  %714 = vmatprep.mubr.bf16.mxu0 %v234_v35  ;;  %v1619_v35 = vld [vmem:[#allocation8 + $0x184] ss:$8 sps:$4 sm:$0xff]  }
 0x120   :  { %674 = vmatmul.mubr.bf16.vlgmr.msra.gmra.mxu1 %v233_v38  ;;  %715 = vmatmul.mubr.bf16.vlgmr.msra.gmra.mxu0 %v233_v38  ;;  %v311_v38 = vsub.s32 2, %v1797_v21 }
 0x121   :  { %1128 = vmatpush1.bf16.msra.mxu1 %v1524_v36  ;;  %1169 = vmatpush1.bf16.msra.mxu0 %v1527_v37  ;;  %v1614_v36 = vld [vmem:[#allocation8 + $0x80] ss:$8 sps:$4 sm:$0xff]  }
 0x122   :  { %1129 = vmatprep.subr.bf16.mxu1 %v1532_v39  ;;  %1170 = vmatprep.subr.bf16.mxu0 %v1535_v40  ;;  %v1617_v37 = vld [vmem:[#allocation8 + $0x180] ss:$8 sps:$4 sm:$0xff]   ;;  %v315_v40 = vsub.s32 3, %v1797_v21 }
 0x123   :  { %v299_v39 = vld [vmem:[%s1830_s4] sm:$0xf] }
 0x125   :  { %1130 = vmatpush1.bf16.msra.mxu1 %v1530_v41  ;;  %1171 = vmatpush1.bf16.msra.mxu0 %v1533_v42  ;;  %v304_v41 = vrot.slane %v299_v39, %v1800_v22  ;;  %v312_v42 = vrot.slane %v299_v39, %v311_v38 }
 0x126   :  { %1131 = vmatprep.subr.bf16.mxu1 %v1538_v43  ;;  %1172 = vmatprep.subr.bf16.mxu0 %v1541_v44  ;;  %v308_v43 = vrot.slane %v299_v39, %v1806_v24  ;;  %v316_v44 = vrot.slane %v299_v39, %v315_v40 }
 0x129   :  { %1132 = vmatpush1.bf16.msra.mxu1 %v1536_v45  ;;  %1173 = vmatpush1.bf16.msra.mxu0 %v1539_v46 }
 0x12a   :  { %1133 = vmatprep.subr.bf16.mxu1 %v1544_v47  ;;  %1174 = vmatprep.subr.bf16.mxu0 %v1547_v48 }
 0x12d   :  { %1134 = vmatpush1.bf16.msra.mxu1 %v1542_v49  ;;  %1175 = vmatpush1.bf16.msra.mxu0 %v1545_v50 }
 0x12e   :  { %1135 = vmatprep.subr.bf16.mxu1 %v1550_v51  ;;  %1176 = vmatprep.subr.bf16.mxu0 %v1553_v52 }
 0x131   :  { %1136 = vmatpush1.bf16.msra.mxu1 %v1548_v53  ;;  %1177 = vmatpush1.bf16.msra.mxu0 %v1551_v54 }
 0x132   :  { %1137 = vmatprep.subr.bf16.mxu1 %v1556_v55  ;;  %1178 = vmatprep.subr.bf16.mxu0 %v1559_v56 }
 0x135   :  { %1138 = vmatpush1.bf16.msra.mxu1 %v1554_v57  ;;  %1179 = vmatpush1.bf16.msra.mxu0 %v1557_v58 }
 0x136   :  { %1139 = vmatprep.subr.bf16.mxu1 %v1562_v59  ;;  %1180 = vmatprep.subr.bf16.mxu0 %v1565_v60 }
 0x139   :  { %1140 = vmatpush1.bf16.msra.mxu1 %v1560_v61  ;;  %1181 = vmatpush1.bf16.msra.mxu0 %v1563_v62 }
 0x13a   :  { %1141 = vmatprep.subr.bf16.mxu1 %v1568_v63  ;;  %1182 = vmatprep.subr.bf16.mxu0 %v1571_v0 }
 0x13d   :  { %1142 = vmatpush1.bf16.msra.mxu1 %v1566_v1  ;;  %1183 = vmatpush1.bf16.msra.mxu0 %v1569_v2  ;;  %v795_v1 = vld [vmem:[%s1832_s6] sm:$0x3]  ;;  %s1738_s6 = smov [#allocation10]  }
 0x13e   :  { %1143 = vmatprep.subr.bf16.mxu1 %v1574_v3  ;;  %1184 = vmatprep.subr.bf16.mxu0 %v1577_v4  ;;  %v800_v2 = vrot.slane %v795_v1, %v1800_v22  ;;  %v1737_v3 = vmov 1966171168   ;;  %s1236_s26 = sshll.u32 %s1738_s6, 4  ;;  %s1237_s26 = int_to_ptr.vmem [resolvable:$true] %s1236_s26 }
 0x13f   :  { %v1215_v4 = vunpack.c.l.s4 %v1737_v3  ;;  %s1700_s27 = scalar_lea.vmem %s1237_s26, 32  ;;  %p1705_p7 = scmp.lt.s32.totalorder %s1237_s26, %s1237_s26 }
 0x140   :  { %p1701_p6 = scmp.ne.s32.totalorder %s1237_s26, %s1700_s27  ;;  %p1706_p8 = scmp.lt.s32.totalorder %s1700_s27, %s1700_s27 }
 0x141   :  { %1144 = vmatpush2.bf16.msra.mxu1 %v1572_v5  ;;  %1185 = vmatpush2.bf16.msra.mxu0 %v1575_v6  ;;  %v804_v5 = vrot.slane %v795_v1, %v1806_v24 }
 0x142   :  { %1145 = vmatprep.subr.bf16.mxu1 %v1580_v7  ;;  %1186 = vmatprep.subr.bf16.mxu0 %v1583_v8  ;;  %p1707_p9 = por %p1706_p8, %p1705_p7 }
 0x144   :  { %p1708_p10 = pnand %p1707_p9, %p1701_p6 }
 0x145   :  { %1146 = vmatpush2.bf16.msra.mxu1 %v1578_v9  ;;  %1187 = vmatpush2.bf16.msra.mxu0 %v1581_v10  ;;  %v1216_v9 = vunpack.c.0.s8 %v1215_v4 }
 0x146   :  { %1147 = vmatprep.subr.bf16.mxu1 %v1586_v11  ;;  %1188 = vmatprep.subr.bf16.mxu0 %v1589_v12 }
 0x149   :  { %1148 = vmatpush2.bf16.msra.mxu1 %v1584_v13  ;;  %1189 = vmatpush2.bf16.msra.mxu0 %v1587_v14 }
 0x14a   :  { %1149 = vmatprep.subr.bf16.mxu1 %v1592_v15  ;;  %1190 = vmatprep.subr.bf16.mxu0 %v1595_v16 }
 0x14d   :  { %1150 = vmatpush2.bf16.msra.mxu1 %v1590_v17  ;;  %1191 = vmatpush2.bf16.msra.mxu0 %v1593_v18  ;;  %v1219_v17 = vsub.s32 %v1216_v9, %v1797_v21 }
 0x14e   :  { %1151 = vmatprep.subr.bf16.mxu1 %v1598_v19  ;;  %1192 = vmatprep.subr.bf16.mxu0 %v1601_v20 }
 0x151   :  { %1152 = vmatpush2.bf16.msra.mxu1 %v1596_v23  ;;  %1193 = vmatpush2.bf16.msra.mxu0 %v1599_v25 }
 0x152   :  { %1153 = vmatprep.subr.bf16.mxu1 %v1604_v26  ;;  %1194 = vmatprep.subr.bf16.mxu0 %v1607_v27 }
 0x155   :  { %1154 = vmatpush2.bf16.msra.mxu1 %v1602_v28  ;;  %1195 = vmatpush2.bf16.msra.mxu0 %v1605_v29 }
 0x156   :  { %1155 = vmatprep.subr.bf16.mxu1 %v1610_v30  ;;  %1196 = vmatprep.subr.bf16.mxu0 %v1613_v31 }
 0x159   :  { %1156 = vmatpush2.bf16.msra.mxu1 %v1608_v32  ;;  %1197 = vmatpush2.bf16.msra.mxu0 %v1611_v33 }
 0x15a   :  { %1157 = vmatprep.subr.bf16.mxu1 %v1616_v34  ;;  %1198 = vmatprep.subr.bf16.mxu0 %v1619_v35 }
 0x15d   :  { %1158 = vmatpush2.bf16.msra.mxu1 %v1614_v36  ;;  %1199 = vmatpush2.bf16.msra.mxu0 %v1617_v37 }
 0x1e0   :  { %v675_v45 = vpop.f32.mrf.mxu1  ;;  %v716_v46 = vpop.f32.mrf.mxu0 }
 0x1e1   :  { %v676_v47 = vadd.f32 %v675_v45, %v304_v41  ;;  %v717_v48 = vadd.f32 %v716_v46, %v312_v42 }
 0x1e2   :  { %v677_v49 = vpop.f32.mrf.mxu1  ;;  %v718_v50 = vpop.f32.mrf.mxu0 }
 0x1e3   :  { %v678_v51 = vadd.f32 %v677_v49, %v308_v43  ;;  %v719_v52 = vadd.f32 %v718_v50, %v316_v44  ;;  %v723_v53 = vmax.f32 %v676_v47, 0.0  ;;  %v725_v54 = vmax.f32 %v717_v48, 0.0 }
 0x1e4   :  { %v679_v55 = vpop.f32.mrf.mxu1  ;;  %v720_v56 = vpop.f32.mrf.mxu0 }
 0x1e5   :  { %v724_v57 = vmax.f32 %v678_v51, 0.0  ;;  %v726_v58 = vmax.f32 %v719_v52, 0.0  ;;  %v727_v63 = vpack.c.bf16 %v723_v53, %v723_v53  ;;  %v729_v0 = vpack.c.bf16 %v725_v54, %v725_v54 }
 0x1e6   :  { %v680_v59 = vpop.f32.mrf.mxu1  ;;  %v721_v60 = vpop.f32.mrf.mxu0 }
 0x1e7   :  { %v728_v61 = vpack.c.bf16 %v724_v57, %v724_v57  ;;  %v730_v62 = vpack.c.bf16 %v726_v58, %v726_v58 }
 0x1e9   :  { %1159 = vmatprep.mubr.bf16.mxu1 %v728_v61  ;;  %1200 = vmatprep.mubr.bf16.mxu0 %v730_v62 }
 0x1ea   :  { %1160 = vmatmul.mubr.bf16.vlgmr.msra.gmra.mxu1 %v727_v63  ;;  %1201 = vmatmul.mubr.bf16.vlgmr.msra.gmra.mxu0 %v729_v0 }
 0x2aa   :  { %v1161_v6 = vpop.f32.mrf.mxu1  ;;  %v1202_v7 = vpop.f32.mrf.mxu0 }
 0x2ab   :  { %v1162_v8 = vadd.f32 %v1161_v6, %v800_v2 }
 0x2ac   :  { %v1163_v10 = vpop.f32.mrf.mxu1  ;;  %v1204_v11 = vpop.f32.mrf.mxu0 }
 0x2ad   :  { %v1164_v12 = vadd.f32 %v1163_v10, %v804_v5  ;;  %v1203_v15 = vadd.f32 %v1202_v7, %v1162_v8 }
 0x2ae   :  { %v1165_v13 = vpop.f32.mrf.mxu1  ;;  %v1206_v14 = vpop.f32.mrf.mxu0 }
 0x2af   :  { %v1205_v16 = vadd.f32 %v1204_v11, %v1164_v12 }
 0x2b0   :  { %v1166_v18 = vpop.f32.mrf.mxu1  ;;  %v1207_v19 = vpop.f32.mrf.mxu0 }
 0x2b1   :  { %v1391_v22 = vpack.c.bf16 %v1205_v16, %v1203_v15 }
 0x2b3   :  { %v1220_v20 = vrot.slane %v1391_v22, %v1219_v17 }
 0x2b5   :  { %1392 = vst.sshfl [vmem:[#allocation10] sm:$0x5 pattern:$0x73625140] %v1220_v20 }
 0x2b6   :  { %1711 = shalt.err (!%p1708_p10)
}
 0x2b7   :  { %1239 = dma.vmem_to_hbm [thread:$0]  %s1237_s26, 32, %s1833_s7, [#allocation4]  }
 0x2b8   :  { %1726 = dma.done.wait [#allocation4], 32  }
 0x2b9   :  { %1727 = vsyncadd [#allocation4], 4294967264 }
 0x2ba   :  { %1243 = vsyncpa [#allocation3], 1 }
 0x2bb   :  { %1244 = vsyncpa [#allocation6], 1 }
 0x2bc   :  { %1245 = vsyncpa [#allocation9], 1 }
 0x2bd   :  { %1246 = vsyncpa [#allocation4], 1 }

</bundles_post_ra>
